<compile_context>
chip_gen: v7x
topology: tpu7x:2x2x1
jax: 0.10.0
libtpu: 0.0.40
codegen_flags: <defaults>
</compile_context>

<pallas_src>
import functools

import jax
import jax.numpy as jnp
from jax.experimental import pallas as pl
from jax.experimental.pallas import tpu as pltpu

HIDDEN = 2048          # fixed by the module definition
_NEG_BIG = -1e30       # bias for padded (fake) classes -> exp(...) underflows to 0 in the LSE


def _round_up(x, m):
    return (x + m - 1) // m * m


def _vmem_capacity_bytes():
    try:
        return int(pltpu.get_tpu_info().vmem_capacity_bytes)
    except Exception:
        return 64 << 20        # conservative fallback (v7x per-TC VMEM)


# --------------------------------------------------------------------------- kernel ---
def _mlp_kernel(x_ref, w1_ref, b1_ref, w2_ref, b2_ref, o_ref, acc_ref):
    k = pl.program_id(1)

    @pl.when(k == 0)
    def _():
        acc_ref[...] = jnp.zeros_like(acc_ref)

    # dense_1 partial sum: x arrives f32 straight from HBM, cast to bf16 in-kernel for
    # the MXU; f32 accumulation in VMEM scratch.
    acc_ref[...] += jnp.dot(x_ref[...].astype(jnp.bfloat16), w1_ref[...],
                            preferred_element_type=jnp.float32)

    @pl.when(k == pl.num_programs(1) - 1)
    def _():
        # bias + ReLU epilogue in f32, single cast to bf16 for the second MXU pass.
        h = jnp.maximum(acc_ref[...] + b1_ref[...], 0.0)
        # Dropout: eval-mode identity (module semantics with training=False).
        # TODO(synk): training-mode dropout via pltpu.prng_seed / prng_random_bits.
        logits = jnp.dot(h.astype(jnp.bfloat16), w2_ref[...],
                         preferred_element_type=jnp.float32)
        logits = logits + b2_ref[...]          # padded classes get -1e30 -> exp == 0
        m = jnp.max(logits, axis=-1, keepdims=True)
        shifted = logits - m
        lse = jnp.log(jnp.sum(jnp.exp(shifted), axis=-1, keepdims=True))
        o_ref[...] = (shifted - lse).astype(o_ref.dtype)


# ------------------------------------------------------------------- params / tiling ---
def prepare_params(w1, b1, w2, b2):
    """One-time conversion (call at init, NOT per forward): bf16 weights, class dim
    padded to a lane-dense multiple of 128, biases reshaped to 2-D f32."""
    C = w2.shape[1]
    C_pad = _round_up(max(C, 128), 128)
    w2p = jnp.pad(w2, ((0, 0), (0, C_pad - C)))
    b2p = jnp.pad(b2, (0, C_pad - C), constant_values=_NEG_BIG)
    return {
        "w1": w1.astype(jnp.bfloat16),
        "b1": b1.astype(jnp.float32).reshape(1, HIDDEN),
        "w2": w2p.astype(jnp.bfloat16),
        "b2": b2p.astype(jnp.float32).reshape(1, C_pad),
        "num_classes": C,
    }


def _choose_tiles(B, D, C_pad, vmem_cap):
    budget = int(vmem_cap * 0.85)                  # headroom for Mosaic internals / sems

    w2_res = HIDDEN * C_pad * 2 + C_pad * 4        # resident bf16 W2 + f32 b2
    b1_res = HIDDEN * 4
    w1_full = D * HIDDEN * 2

    # K (input-dim) tiling: W1 fully resident while it fits comfortably.  A D that is
    # not a multiple of 128 must be a single full-dim block anyway (lane rule).
    if D % 128 != 0 or w1_full + w2_res + b1_res <= budget // 2:
        block_k = D
    else:
        block_k = 128
        for cand in range(2048, 127, -128):        # largest /128 divisor of D, <= 2048
            if D % cand == 0:
                block_k = cand
                break

    gk = -(-D // block_k)
    w1_buf = block_k * HIDDEN * 2 * (1 if gk == 1 else 2)   # resident vs streamed x2
    fixed = w1_buf + w2_res + b1_res

    def per_b(bb):
        return (2 * bb * block_k * 4               # x tile (f32, double-buffered)
                + 2 * bb * C_pad * 4               # out tile (f32, double-buffered)
                + bb * HIDDEN * 4                  # f32 accumulator scratch
                + bb * (HIDDEN * 2 + C_pad * 8))   # bf16 h + softmax temporaries

    block_b = 16
    for cand in (1024, 512, 256, 128, 64, 32, 16):   # multiples of 16 (bf16 sublanes)
        if fixed + per_b(cand) <= budget:
            block_b = cand
            break

    block_b = min(block_b, _round_up(B, 16))       # no giant block for tiny batches
    if B > 16:
        # keep >= 2 batch grid steps so ("parallel", ...) can use both v7x TensorCores
        block_b = min(block_b, max(16, _round_up(-(-B // 2), 16)))

    vmem_plan = fixed + per_b(block_b)
    vmem_limit = min(budget, max(vmem_plan + (8 << 20), 32 << 20))
    return block_b, block_k, vmem_limit


# ------------------------------------------------------------------------ dispatcher ---
@functools.partial(jax.jit, static_argnames=("block_b", "block_k", "vmem_limit"))
def _mlp_pallas(x, w1, b1, w2, b2, *, block_b, block_k, vmem_limit):
    B, D = x.shape
    C_pad = w2.shape[1]
    grid = (pl.cdiv(B, block_b), pl.cdiv(D, block_k))
    gk = grid[1]

    def resident(shape):
        # Constant index_map -> block never changes; single buffer halves VMEM use.
        try:
            return pl.BlockSpec(shape, lambda i, k: (0, 0), pipeline_mode=pl.Buffered(1))
        except TypeError:     # older Pallas without pipeline_mode: default buffering
            return pl.BlockSpec(shape, lambda i, k: (0, 0))

    w1_spec = (resident((block_k, HIDDEN)) if gk == 1
               else pl.BlockSpec((block_k, HIDDEN), lambda i, k: (k, 0)))

    return pl.pallas_call(
        _mlp_kernel,
        out_shape=jax.ShapeDtypeStruct((B, C_pad), jnp.float32),
        grid_spec=pltpu.PrefetchScalarGridSpec(
            num_scalar_prefetch=0,
            grid=grid,
            in_specs=[
                pl.BlockSpec((block_b, block_k), lambda i, k: (i, k)),  # x (pipelined)
                w1_spec,                                                # W1
                resident((1, HIDDEN)),                                  # b1
                resident((HIDDEN, C_pad)),                              # W2 (resident)
                resident((1, C_pad)),                                   # b2
            ],
            # Ragged last batch block: OOB rows may hold garbage / nan but are sliced
            # away by the caller (log_softmax is strictly per-row).
            out_specs=pl.BlockSpec((block_b, C_pad), lambda i, k: (i, 0)),
            scratch_shapes=[pltpu.VMEM((block_b, HIDDEN), jnp.float32)],
        ),
        compiler_params=pltpu.CompilerParams(
            dimension_semantics=("parallel", "arbitrary"),
            vmem_limit_bytes=vmem_limit,
        ),
    )(x, w1, b1, w2, b2)


def mlp_forward(x, params):
    """Forward pass of MLPModel (eval mode).  x: (B, input_dim) f32."""
    B, D = x.shape
    C = params["num_classes"]
    C_pad = params["w2"].shape[1]
    block_b, block_k, vmem_limit = _choose_tiles(B, D, C_pad, _vmem_capacity_bytes())
    out = _mlp_pallas(x, params["w1"], params["b1"], params["w2"], params["b2"],
                      block_b=block_b, block_k=block_k, vmem_limit=vmem_limit)
    return out[:, :C]


def init_params(key, input_dim, num_classes, dtype=jnp.float32):
    """Deterministic PyTorch-style (Kaiming-uniform-ish) init; weights stored (in, out)."""
    k1, k2, k3, k4 = jax.random.split(key, 4)
    bound1 = 1.0 / (input_dim ** 0.5)
    bound2 = 1.0 / (HIDDEN ** 0.5)
    w1 = jax.random.uniform(k1, (input_dim, HIDDEN), dtype, -bound1, bound1)
    b1 = jax.random.uniform(k2, (HIDDEN,), dtype, -bound1, bound1)
    w2 = jax.random.uniform(k3, (HIDDEN, num_classes), dtype, -bound2, bound2)
    b2 = jax.random.uniform(k4, (num_classes,), dtype, -bound2, bound2)
    return w1, b1, w2, b2


if __name__ == "__main__":
    batch, input_dim, num_classes = 8, 64, 16

    key = jax.random.PRNGKey(0)
    kx, kp = jax.random.split(key)
    x = jax.random.normal(kx, (batch, input_dim), jnp.float32)
    w1, b1, w2, b2 = init_params(kp, input_dim, num_classes)

    params = prepare_params(w1, b1, w2, b2)       # one-time bf16 cast + class padding
    out = jax.block_until_ready(mlp_forward(x, params))

    # Reference in plain JAX (eval-mode dropout = identity), f32 end-to-end.
    # Kernel uses bf16 MXU operands with f32 accumulation -> loosened tolerance.
    h_ref = jnp.maximum(x @ w1 + b1, 0.0)
    ref = jax.nn.log_softmax(h_ref @ w2 + b2, axis=1)
    assert out.shape == (batch, num_classes)
    assert jnp.allclose(out, ref, atol=2e-2, rtol=2e-2), "mismatch vs reference"

    print("KERNEL_OK")
</pallas_src>

<mosaic_0001>
module attributes {stable_mosaic.version = 11 : i64} {
  func.func @_mlp_kernel(%arg0: i32, %arg1: i32, %arg2: memref<16x64xf32, #tpu.memory_space<vmem>>, %arg3: memref<64x2048xbf16, #tpu.memory_space<vmem>>, %arg4: memref<1x2048xf32, #tpu.memory_space<vmem>>, %arg5: memref<2048x128xbf16, #tpu.memory_space<vmem>>, %arg6: memref<1x128xf32, #tpu.memory_space<vmem>>, %arg7: memref<16x128xf32, #tpu.memory_space<vmem>>, %arg8: memref<16x2048xf32, #tpu.memory_space<vmem>>) attributes {dimension_semantics = [#tpu.dimension_semantics<parallel>, #tpu.dimension_semantics<arbitrary>], iteration_bounds = array<i64: 1, 1>, scalar_prefetch = 0 : i64, scratch_operands = 1 : i64, tpu.core_type = #tpu.core_type<tc>, window_params = [{transform_indices = @transform_0, window_bounds = array<i64: 16, 64>}, {pipeline_mode = #tpu.pipeline_mode<synchronous>, transform_indices = @transform_1, window_bounds = array<i64: 64, 2048>}, {pipeline_mode = #tpu.pipeline_mode<synchronous>, transform_indices = @transform_2, window_bounds = array<i64: 1, 2048>}, {pipeline_mode = #tpu.pipeline_mode<synchronous>, transform_indices = @transform_3, window_bounds = array<i64: 2048, 128>}, {pipeline_mode = #tpu.pipeline_mode<synchronous>, transform_indices = @transform_4, window_bounds = array<i64: 1, 128>}, {transform_indices = @transform_5, window_bounds = array<i64: 16, 128>}]} {
    %c0_i32 = arith.constant 0 : i32
    %0 = arith.cmpi eq, %arg1, %c0_i32 : i32
    %1 = arith.extui %0 : i1 to i32
    %c0_i32_0 = arith.constant 0 : i32
    %2 = arith.cmpi ne, %1, %c0_i32_0 : i32
    scf.if %2 {
      %cst_10 = arith.constant 0.000000e+00 : f32
      %13 = vector.broadcast %cst_10 : f32 to vector<16x2048xf32>
      %c0_11 = arith.constant 0 : index
      %c0_12 = arith.constant 0 : index
      %14 = vector.load %arg8[%c0_11, %c0_12] : memref<16x2048xf32, #tpu.memory_space<vmem>>, vector<16x2048xf32>
      tpu.vector_store %arg8[%c0_11, %c0_12], %13 {strides = array<i32>} : memref<16x2048xf32, #tpu.memory_space<vmem>>, vector<16x2048xf32>,
    } else {
    }
    %c0 = arith.constant 0 : index
    %c0_1 = arith.constant 0 : index
    %3 = vector.load %arg8[%c0, %c0_1] : memref<16x2048xf32, #tpu.memory_space<vmem>>, vector<16x2048xf32>
    %c0_2 = arith.constant 0 : index
    %c0_3 = arith.constant 0 : index
    %4 = vector.load %arg2[%c0_2, %c0_3] : memref<16x64xf32, #tpu.memory_space<vmem>>, vector<16x64xf32>
    %5 = arith.truncf %4 : vector<16x64xf32> to vector<16x64xbf16>
    %c0_4 = arith.constant 0 : index
    %c0_5 = arith.constant 0 : index
    %6 = vector.load %arg3[%c0_4, %c0_5] : memref<64x2048xbf16, #tpu.memory_space<vmem>>, vector<64x2048xbf16>
    %cst = arith.constant dense<0.000000e+00> : vector<16x2048xf32>
    %7 = tpu.matmul %5, %6, %cst {dimension_numbers = #tpu.dot_dimension_numbers<[1], [0], [0], [1], [0, 0, 1, 1], [], []>} : vector<16x64xbf16>, vector<64x2048xbf16>, vector<16x2048xf32> -> vector<16x2048xf32>
    %8 = arith.addf %3, %7 : vector<16x2048xf32>
    %c0_6 = arith.constant 0 : index
    %c0_7 = arith.constant 0 : index
    %9 = vector.load %arg8[%c0_6, %c0_7] : memref<16x2048xf32, #tpu.memory_space<vmem>>, vector<16x2048xf32>
    tpu.vector_store %arg8[%c0_6, %c0_7], %8 {strides = array<i32>} : memref<16x2048xf32, #tpu.memory_space<vmem>>, vector<16x2048xf32>,
    %c0_i32_8 = arith.constant 0 : i32
    %10 = arith.cmpi eq, %arg1, %c0_i32_8 : i32
    %11 = arith.extui %10 : i1 to i32
    %c0_i32_9 = arith.constant 0 : i32
    %12 = arith.cmpi ne, %11, %c0_i32_9 : i32
    scf.if %12 {
      %c0_10 = arith.constant 0 : index
      %c0_11 = arith.constant 0 : index
      %13 = vector.load %arg8[%c0_10, %c0_11] : memref<16x2048xf32, #tpu.memory_space<vmem>>, vector<16x2048xf32>
      %c0_12 = arith.constant 0 : index
      %c0_13 = arith.constant 0 : index
      %14 = vector.load %arg4[%c0_12, %c0_13] : memref<1x2048xf32, #tpu.memory_space<vmem>>, vector<1x2048xf32>
      %15 = vector.broadcast %14 : vector<1x2048xf32> to vector<16x2048xf32>
      %16 = arith.addf %13, %15 : vector<16x2048xf32>
      %cst_14 = arith.constant 0.000000e+00 : f32
      %17 = vector.broadcast %cst_14 : f32 to vector<16x2048xf32>
      %18 = arith.maximumf %16, %17 : vector<16x2048xf32>
      %19 = arith.truncf %18 : vector<16x2048xf32> to vector<16x2048xbf16>
      %c0_15 = arith.constant 0 : index
      %c0_16 = arith.constant 0 : index
      %20 = vector.load %arg5[%c0_15, %c0_16] : memref<2048x128xbf16, #tpu.memory_space<vmem>>, vector<2048x128xbf16>
      %cst_17 = arith.constant dense<0.000000e+00> : vector<16x128xf32>
      %21 = tpu.matmul %19, %20, %cst_17 {dimension_numbers = #tpu.dot_dimension_numbers<[1], [0], [0], [1], [0, 0, 1, 1], [], []>} : vector<16x2048xbf16>, vector<2048x128xbf16>, vector<16x128xf32> -> vector<16x128xf32>
      %c0_18 = arith.constant 0 : index
      %c0_19 = arith.constant 0 : index
      %22 = vector.load %arg6[%c0_18, %c0_19] : memref<1x128xf32, #tpu.memory_space<vmem>>, vector<1x128xf32>
      %23 = vector.broadcast %22 : vector<1x128xf32> to vector<16x128xf32>
      %24 = arith.addf %21, %23 : vector<16x128xf32>
      %cst_20 = arith.constant dense<0xFF800000> : vector<16xf32>
      %25 = vector.multi_reduction <maximumf>, %24, %cst_20 [1] : vector<16x128xf32> to vector<16xf32>
      %26 = vector.shape_cast %25 : vector<16xf32> to vector<16x1xf32>
      %27 = vector.broadcast %26 : vector<16x1xf32> to vector<16x128xf32>
      %28 = arith.subf %24, %27 : vector<16x128xf32>
      %29 = math.exp %28 : vector<16x128xf32>
      %cst_21 = arith.constant dense<0.000000e+00> : vector<16xf32>
      %30 = vector.multi_reduction <add>, %29, %cst_21 [1] : vector<16x128xf32> to vector<16xf32>
      %31 = vector.shape_cast %30 : vector<16xf32> to vector<16x1xf32>
      %32 = math.log %31 : vector<16x1xf32>
      %33 = vector.broadcast %32 : vector<16x1xf32> to vector<16x128xf32>
      %34 = arith.subf %28, %33 : vector<16x128xf32>
      %c0_22 = arith.constant 0 : index
      %c0_23 = arith.constant 0 : index
      %35 = vector.load %arg7[%c0_22, %c0_23] : memref<16x128xf32, #tpu.memory_space<vmem>>, vector<16x128xf32>
      tpu.vector_store %arg7[%c0_22, %c0_23], %34 {strides = array<i32>} : memref<16x128xf32, #tpu.memory_space<vmem>>, vector<16x128xf32>,
    } else {
    }
    return
  }
  func.func @transform_0(%arg0: i32, %arg1: i32) -> (i32, i32) {
    %c0_i32 = arith.constant 0 : i32
    return %arg0, %arg1 : i32, i32
  }
  func.func @transform_1(%arg0: i32, %arg1: i32) -> (i32, i32) {
    %c0_i32 = arith.constant 0 : i32
    %c0_i32_0 = arith.constant 0 : i32
    %c0_i32_1 = arith.constant 0 : i32
    return %c0_i32, %c0_i32_0 : i32, i32
  }
  func.func @transform_2(%arg0: i32, %arg1: i32) -> (i32, i32) {
    %c0_i32 = arith.constant 0 : i32
    %c0_i32_0 = arith.constant 0 : i32
    %c0_i32_1 = arith.constant 0 : i32
    return %c0_i32, %c0_i32_0 : i32, i32
  }
  func.func @transform_3(%arg0: i32, %arg1: i32) -> (i32, i32) {
    %c0_i32 = arith.constant 0 : i32
    %c0_i32_0 = arith.constant 0 : i32
    %c0_i32_1 = arith.constant 0 : i32
    return %c0_i32, %c0_i32_0 : i32, i32
  }
  func.func @transform_4(%arg0: i32, %arg1: i32) -> (i32, i32) {
    %c0_i32 = arith.constant 0 : i32
    %c0_i32_0 = arith.constant 0 : i32
    %c0_i32_1 = arith.constant 0 : i32
    return %c0_i32, %c0_i32_0 : i32, i32
  }
  func.func @transform_5(%arg0: i32, %arg1: i32) -> (i32, i32) {
    %c0_i32 = arith.constant 0 : i32
    %c0_i32_0 = arith.constant 0 : i32
    return %arg0, %c0_i32 : i32, i32
  }
}

</mosaic_0001>

<bundles_post_ra>
// kernel: _mlp_pallas.1
= control target key start
LH: loop header
LB: loop body
LE: loop exit
PB: predicated region body
PF: predicated region fallthrough
CT: control target
= control target key end

     0   :  { %10 = vsyncpa [#allocation4], 0  ;;  %s3399_s0 = inlined_call_operand.hbm [shape: f32[8,64], index: 0, kind: input, shape index: {}]   ;;  %s3400_s1 = inlined_call_operand.hbm [shape: bf16[64,2048], index: 1, kind: input, shape index: {}]   ;;  %s3401_s2 = inlined_call_operand.hbm [shape: f32[1,2048], index: 2, kind: input, shape index: {}]   ;;  %s3402_s3 = inlined_call_operand.hbm [shape: bf16[2048,128], index: 3, kind: input, shape index: {}]   ;;  %s3403_s4 = inlined_call_operand.vmem [shape: f32[1,128], index: 4, kind: input, shape index: {}]   ;;  %s3404_s5 = inlined_call_operand.hbm [shape: f32[8,128], index: 5, kind: output, shape index: {}]  }
   0x1   :  { %11 = vsyncpa [#allocation7], 0 }
   0x2   :  { %12 = vsyncpa [#allocation10], 0 }
   0x3   :  { %13 = vsyncpa [#allocation5], 0 }
   0x4   :  { %18 = vsyncadd [#allocation4], 128  ;;  %s3183_s18 = smov [#allocation6]   ;;  %s3065_s22 = scalar_lea.hbm %s3400_s1, 8192 }
   0x5   :  { %s31_s19 = sshll.u32 %s3183_s18, 4  ;;  %p3066_p0 = scmp.ne.s32.totalorder %s3400_s1, %s3065_s22  ;;  %s32_s19 = int_to_ptr.vmem [resolvable:$true] %s31_s19 }
   0x6   :  { %p3069_p1 = scmp.lt.u32.totalorder %s3065_s22, %s3400_s1 }
   0x8   :  { %p3071_p2 = pnand %p3069_p1, %p3066_p0 }
   0xa   :  { %3074 = shalt.err (!%p3071_p2)
}
   0xb   :  { %s3075_s27 = scalar_lea.vmem %s32_s19, 8192  ;;  %p3080_p4 = scmp.lt.s32.totalorder %s32_s19, %s32_s19 }
   0xc   :  { %p3076_p3 = scmp.ne.s32.totalorder %s32_s19, %s3075_s27  ;;  %p3081_p5 = scmp.lt.s32.totalorder %s3075_s27, %s3075_s27 }
   0xe   :  { %p3082_p6 = por %p3081_p5, %p3080_p4 }
  0x10   :  { %p3083_p7 = pnand %p3082_p6, %p3076_p3 }
  0x12   :  { %3086 = shalt.err (!%p3083_p7)
}
  0x13   :  { %s3184_s28 = smov 1024   ;;  %s3185_s29 = smov 64  }
  0x14   :  { %37 = dma.hbm_to_vmem [thread:$0]  %s3400_s1, 8192, %s32_s19, [#allocation7], %s3184_s28, %s3184_s28, %s3185_s29  }
  0x15   :  { %s3186_s7 = smov [#allocation3]   ;;  %s3087_s11 = scalar_lea.hbm %s3399_s0, 128 }
  0x16   :  { %s19_s8 = sshll.u32 %s3186_s7, 4  ;;  %p3088_p8 = scmp.ne.s32.totalorder %s3399_s0, %s3087_s11  ;;  %s20_s8 = int_to_ptr.vmem [resolvable:$true] %s19_s8 }
  0x17   :  { %p3091_p9 = scmp.lt.u32.totalorder %s3087_s11, %s3399_s0 }
  0x19   :  { %p3093_p10 = pnand %p3091_p9, %p3088_p8 }
  0x1b   :  { %3096 = shalt.err (!%p3093_p10)
}
  0x1c   :  { %s3097_s16 = scalar_lea.vmem %s20_s8, 128  ;;  %s3101_s1 = scalar_lea.vmem %s20_s8, 256 }
  0x1d   :  { %p3098_p11 = scmp.ne.s32.totalorder %s20_s8, %s3097_s16  ;;  %p3102_p12 = scmp.lt.s32.totalorder %s20_s8, %s20_s8 }
  0x1e   :  { %p3103_p13 = scmp.lt.s32.totalorder %s3101_s1, %s3097_s16 }
  0x20   :  { %p3104_p0 = por %p3103_p13, %p3102_p12 }
  0x22   :  { %p3105_p1 = pnand %p3104_p0, %p3098_p11 }
  0x24   :  { %3108 = shalt.err (!%p3105_p1)
}
  0x25   :  { %s3187_s17 = smov 128   ;;  %s3188_s18 = smov 8  }
  0x26   :  { %25 = dma.hbm_to_vmem [thread:$0]  %s3399_s0, 128, %s20_s8, [#allocation4], %s3187_s17, %s3187_s17, %s3188_s18  }
  0x27   :  { %s3189_s21 = smov [#allocation8]   ;;  %s3190_s23 = smov [#allocation9]  }
  0x28   :  { %s44_s22 = sshll.u32 %s3189_s21, 4  ;;  %s53_s24 = sshll.u32 %s3190_s23, 4  ;;  %s45_s22 = int_to_ptr.vmem [resolvable:$true] %s44_s22  ;;  %s3252_s24 = int_to_ptr.vmem [resolvable:$true] %s53_s24 }
  0x29   :  { %s3109_s27 = scalar_lea.hbm %s3401_s2, 256 }
  0x2a   :  { %p3110_p2 = scmp.ne.s32.totalorder %s3401_s2, %s3109_s27  ;;  %p3113_p3 = scmp.lt.u32.totalorder %s3109_s27, %s3401_s2 }
  0x2c   :  { %p3115_p4 = pnand %p3113_p3, %p3110_p2 }
  0x2e   :  { %3118 = shalt.err (!%p3115_p4)
}
  0x2f   :  { %s3119_s0 = scalar_lea.vmem %s45_s22, 256  ;;  %p3124_p6 = scmp.lt.s32.totalorder %s45_s22, %s45_s22 }
  0x30   :  { %p3120_p5 = scmp.ne.s32.totalorder %s45_s22, %s3119_s0  ;;  %p3125_p7 = scmp.lt.s32.totalorder %s3119_s0, %s3119_s0 }
  0x32   :  { %p3126_p8 = por %p3125_p7, %p3124_p6 }
  0x34   :  { %p3127_p9 = pnand %p3126_p8, %p3120_p5 }
  0x36   :  { %3130 = shalt.err (!%p3127_p9)
}
  0x37   :  { %47 = dma.hbm_to_vmem [thread:$0]  %s3401_s2, 256, %s45_s22, [#allocation7]  }
  0x38   :  { %s3131_s12 = scalar_lea.hbm %s3402_s3, 16384 }
  0x39   :  { %p3132_p10 = scmp.ne.s32.totalorder %s3402_s3, %s3131_s12  ;;  %p3135_p11 = scmp.lt.u32.totalorder %s3131_s12, %s3402_s3 }
  0x3b   :  { %p3137_p12 = pnand %p3135_p11, %p3132_p10 }
  0x3d   :  { %3140 = shalt.err (!%p3137_p12)
}
  0x3e   :  { %s3141_s1 = scalar_lea.vmem %s3252_s24, 16384  ;;  %p3146_p0 = scmp.lt.s32.totalorder %s3252_s24, %s3252_s24 }
  0x3f   :  { %p3142_p13 = scmp.ne.s32.totalorder %s3252_s24, %s3141_s1  ;;  %p3147_p1 = scmp.lt.s32.totalorder %s3141_s1, %s3141_s1 }
  0x41   :  { %p3148_p2 = por %p3147_p1, %p3146_p0 }
  0x43   :  { %p3149_p3 = pnand %p3148_p2, %p3142_p13 }
  0x45   :  { %3152 = shalt.err (!%p3149_p3)
}
  0x46   :  { %s3191_s2 = smov 4  }
  0x47   :  { %59 = dma.hbm_to_vmem [thread:$0]  %s3402_s3, 16384, %s3252_s24, [#allocation10], %s3185_s29, %s3185_s29, %s3191_s2  }
  0x48   :  { %3175 = dma.done.wait [#allocation4], 256  }
  0x49   :  { %3176 = vsyncadd [#allocation4], 4294967040 }
  0x4a   :  { %3177 = dma.done.wait [#allocation7], 8448  }
  0x4b   :  { %3178 = vsyncadd [#allocation7], 4294958848 }
  0x4c   :  { %3179 = dma.done.wait [#allocation10], 16384  }
  0x4d   :  { %3180 = vsyncadd [#allocation10], 4294950912  ;;  %v3192_v0 = vmov 0   ;;  %v146_v1 = vld [vmem:[#allocation6] sm:$0xff]  ;;  %v147_v3 = vld [vmem:[#allocation6 + $0x8] sm:$0xff]  ;;  %vm530_vm0 = vcmask 523264  }
  0x4e   :  { %566 = vmatprep.mubr.bf16.mxu0 %v3192_v0  ;;  %609 = vmatprep.mubr.bf16.mxu1 %v3192_v0  ;;  %v154_v2 = vld [vmem:[#allocation6 + $0x40] sm:$0xff]  ;;  %v155_v5 = vld [vmem:[#allocation6 + $0x48] sm:$0xff]  ;;  %v148_v31 = vld [vmem:[#allocation6 + $0x10] sm:$0xff] }
  0x4f   :  { %v2542_v4 = vcombine.high %v146_v1, %v154_v2  ;;  %v2541_v6 = vcombine.low %v146_v1, %v154_v2  ;;  %v162_v7 = vld [vmem:[#allocation6 + $0x80] sm:$0xff]  ;;  %v2544_v9 = vcombine.high %v147_v3, %v155_v5  ;;  %v2543_v10 = vcombine.low %v147_v3, %v155_v5  ;;  %v163_v12 = vld [vmem:[#allocation6 + $0x88] sm:$0xff]  ;;  %v156_v32 = vld [vmem:[#allocation6 + $0x50] sm:$0xff] }
  0x50   :  { %v170_v8 = vld [vmem:[#allocation6 + $0xc0] sm:$0xff]  ;;  %v171_v13 = vld [vmem:[#allocation6 + $0xc8] sm:$0xff]  ;;  %v149_v33 = vld [vmem:[#allocation6 + $0x18] sm:$0xff]  ;;  %v2546_v39 = vcombine.high %v148_v31, %v156_v32  ;;  %v2545_v46 = vcombine.low %v148_v31, %v156_v32 }
  0x51   :  { %v2558_v11 = vcombine.high %v162_v7, %v170_v8  ;;  %v178_v14 = vld [vmem:[#allocation6 + $0x100] sm:$0xff]  ;;  %534 = vmatprep.subr.bf16.mxu0 %v2542_v4  ;;  %v2560_v15 = vcombine.high %v163_v12, %v171_v13  ;;  %v179_v17 = vld [vmem:[#allocation6 + $0x108] sm:$0xff]  ;;  %577 = vmatprep.subr.bf16.mxu1 %v2544_v9  ;;  %v2557_v19 = vcombine.low %v162_v7, %v170_v8  ;;  %v157_v34 = vld [vmem:[#allocation6 + $0x58] sm:$0xff] }
  0x52   :  { %v186_v16 = vld [vmem:[#allocation6 + $0x140] sm:$0xff]  ;;  %v187_v18 = vld [vmem:[#allocation6 + $0x148] sm:$0xff]  ;;  %535 = vmatpush1.bf16.msra.mxu0 %v2541_v6  ;;  %578 = vmatpush1.bf16.msra.mxu1 %v2543_v10  ;;  %v2559_v20 = vcombine.low %v163_v12, %v171_v13  ;;  %v143_v36 = vld [vmem:[#allocation3] sm:$0xff]  ;;  %v2548_v40 = vcombine.high %v149_v33, %v157_v34  ;;  %v2547_v47 = vcombine.low %v149_v33, %v157_v34 }
  0x53   :  { %536 = vmatprep.subr.bf16.mxu0 %v2558_v11  ;;  %v2574_v21 = vcombine.high %v178_v14, %v186_v16  ;;  %579 = vmatprep.subr.bf16.mxu1 %v2560_v15  ;;  %v2576_v22 = vcombine.high %v179_v17, %v187_v18  ;;  %v194_v23 = vld [vmem:[#allocation6 + $0x180] sm:$0xff]  ;;  %v195_v25 = vld [vmem:[#allocation6 + $0x188] sm:$0xff]  ;;  %v2573_v27 = vcombine.low %v178_v14, %v186_v16  ;;  %v144_v37 = vld [vmem:[#allocation3 + $0x8] sm:$0xff] }
  0x54   :  { %v202_v24 = vld [vmem:[#allocation6 + $0x1c0] sm:$0xff]  ;;  %v203_v26 = vld [vmem:[#allocation6 + $0x1c8] sm:$0xff]  ;;  %v2575_v28 = vcombine.low %v179_v17, %v187_v18  ;;  %v164_v41 = vld [vmem:[#allocation6 + $0x90] sm:$0xff]  ;;  %v3287_v43 = vpack.c.bf16 %v144_v37, %v143_v36 }
  0x55   :  { %v2590_v29 = vcombine.high %v194_v23, %v202_v24  ;;  %v2592_v30 = vcombine.high %v195_v25, %v203_v26  ;;  %v2589_v35 = vcombine.low %v194_v23, %v202_v24  ;;  %v2591_v38 = vcombine.low %v195_v25, %v203_v26  ;;  %v172_v42 = vld [vmem:[#allocation6 + $0xd0] sm:$0xff]  ;;  %v165_v44 = vld [vmem:[#allocation6 + $0x98] sm:$0xff]  ;;  %v150_v63 = vld [vmem:[#allocation6 + $0x20] sm:$0xff] }
  0x56   :  { %537 = vmatpush1.bf16.msra.mxu0 %v2557_v19  ;;  %580 = vmatpush1.bf16.msra.mxu1 %v2559_v20  ;;  %v173_v45 = vld [vmem:[#allocation6 + $0xd8] sm:$0xff]  ;;  %v2562_v48 = vcombine.high %v164_v41, %v172_v42  ;;  %v180_v50 = vld [vmem:[#allocation6 + $0x110] sm:$0xff]  ;;  %v2561_v54 = vcombine.low %v164_v41, %v172_v42  ;;  %v158_v3 = vld [vmem:[#allocation6 + $0x60] sm:$0xff] }
  0x57   :  { %538 = vmatprep.subr.bf16.mxu0 %v2574_v21  ;;  %581 = vmatprep.subr.bf16.mxu1 %v2576_v22  ;;  %v2564_v49 = vcombine.high %v165_v44, %v173_v45  ;;  %v188_v51 = vld [vmem:[#allocation6 + $0x150] sm:$0xff]  ;;  %v181_v52 = vld [vmem:[#allocation6 + $0x118] sm:$0xff]  ;;  %v2563_v55 = vcombine.low %v165_v44, %v173_v45  ;;  %v151_v5 = vld [vmem:[#allocation6 + $0x28] sm:$0xff]  ;;  %v2550_v10 = vcombine.high %v150_v63, %v158_v3 }
  0x58   :  { %v189_v53 = vld [vmem:[#allocation6 + $0x158] sm:$0xff]  ;;  %v2578_v56 = vcombine.high %v180_v50, %v188_v51  ;;  %v196_v57 = vld [vmem:[#allocation6 + $0x190] sm:$0xff]  ;;  %v2577_v62 = vcombine.low %v180_v50, %v188_v51  ;;  %v159_v6 = vld [vmem:[#allocation6 + $0x68] sm:$0xff]  ;;  %v2549_v15 = vcombine.low %v150_v63, %v158_v3 }
  0x59   :  { %v204_v58 = vld [vmem:[#allocation6 + $0x1d0] sm:$0xff]  ;;  %v2580_v59 = vcombine.high %v181_v52, %v189_v53  ;;  %v197_v60 = vld [vmem:[#allocation6 + $0x198] sm:$0xff]  ;;  %v2579_v1 = vcombine.low %v181_v52, %v189_v53  ;;  %v166_v8 = vld [vmem:[#allocation6 + $0xa0] sm:$0xff]  ;;  %v2552_v12 = vcombine.high %v151_v5, %v159_v6  ;;  %v2551_v17 = vcombine.low %v151_v5, %v159_v6 }
  0x5a   :  { %539 = vmatpush1.bf16.msra.mxu0 %v2573_v27  ;;  %582 = vmatpush1.bf16.msra.mxu1 %v2575_v28  ;;  %v205_v61 = vld [vmem:[#allocation6 + $0x1d8] sm:$0xff]  ;;  %v2594_v2 = vcombine.high %v196_v57, %v204_v58  ;;  %v2593_v7 = vcombine.low %v196_v57, %v204_v58  ;;  %v174_v11 = vld [vmem:[#allocation6 + $0xe0] sm:$0xff]  ;;  %v167_v13 = vld [vmem:[#allocation6 + $0xa8] sm:$0xff] }
  0x5b   :  { %540 = vmatprep.subr.bf16.mxu0 %v2590_v29  ;;  %583 = vmatprep.subr.bf16.mxu1 %v2592_v30  ;;  %v2596_v4 = vcombine.high %v197_v60, %v205_v61  ;;  %v2595_v9 = vcombine.low %v197_v60, %v205_v61  ;;  %v175_v14 = vld [vmem:[#allocation6 + $0xe8] sm:$0xff]  ;;  %v182_v16 = vld [vmem:[#allocation6 + $0x120] sm:$0xff]  ;;  %v2566_v18 = vcombine.high %v166_v8, %v174_v11  ;;  %v152_v32 = vld [vmem:[#allocation6 + $0x30] sm:$0xff] }
  0x5c   :  { %v190_v19 = vld [vmem:[#allocation6 + $0x160] sm:$0xff]  ;;  %v2568_v20 = vcombine.high %v167_v13, %v175_v14  ;;  %v183_v21 = vld [vmem:[#allocation6 + $0x128] sm:$0xff]  ;;  %v2565_v23 = vcombine.low %v166_v8, %v174_v11  ;;  %v2567_v25 = vcombine.low %v167_v13, %v175_v14  ;;  %v153_v37 = vld [vmem:[#allocation6 + $0x38] sm:$0xff] }
  0x5d   :  { %v191_v22 = vld [vmem:[#allocation6 + $0x168] sm:$0xff]  ;;  %v198_v24 = vld [vmem:[#allocation6 + $0x1a0] sm:$0xff]  ;;  %v2582_v26 = vcombine.high %v182_v16, %v190_v19  ;;  %v2581_v31 = vcombine.low %v182_v16, %v190_v19  ;;  %v176_v41 = vld [vmem:[#allocation6 + $0xf0] sm:$0xff] }
  0x5e   :  { %541 = vmatpush1.bf16.msra.mxu0 %v2589_v35  ;;  %584 = vmatpush1.bf16.msra.mxu1 %v2591_v38  ;;  %v206_v27 = vld [vmem:[#allocation6 + $0x1e0] sm:$0xff]  ;;  %v2584_v28 = vcombine.high %v183_v21, %v191_v22  ;;  %v199_v29 = vld [vmem:[#allocation6 + $0x1a8] sm:$0xff]  ;;  %v2583_v33 = vcombine.low %v183_v21, %v191_v22  ;;  %v160_v35 = vld [vmem:[#allocation6 + $0x70] sm:$0xff] }
  0x5f   :  { %620 = vmatprep.subr.bf16.mxu0 %v2546_v39  ;;  %663 = vmatprep.subr.bf16.mxu1 %v2548_v40  ;;  %v207_v30 = vld [vmem:[#allocation6 + $0x1e8] sm:$0xff]  ;;  %v2598_v34 = vcombine.high %v198_v24, %v206_v27  ;;  %v161_v38 = vld [vmem:[#allocation6 + $0x78] sm:$0xff]  ;;  %v2597_v39 = vcombine.low %v198_v24, %v206_v27  ;;  %v168_v40 = vld [vmem:[#allocation6 + $0xb0] sm:$0xff]  ;;  %v2554_v44 = vcombine.high %v152_v32, %v160_v35 }
  0x60   :  { %v2600_v36 = vcombine.high %v199_v29, %v207_v30  ;;  %v2599_v42 = vcombine.low %v199_v29, %v207_v30  ;;  %v169_v45 = vld [vmem:[#allocation6 + $0xb8] sm:$0xff]  ;;  %v192_v50 = vld [vmem:[#allocation6 + $0x170] sm:$0xff]  ;;  %v2555_v51 = vcombine.low %v153_v37, %v161_v38  ;;  %v2570_v52 = vcombine.high %v168_v40, %v176_v41  ;;  %v2937_v14 = vld [vmem:[#allocation9 + $0x50] sm:$0xff]  }
  0x61   :  { %2605 = vmatmul.mubr.msk.bf16.vlgmr.msra.gmra.mrb[0].mxu0 %vm530_vm0, %v3287_v43  ;;  %2606 = vmatmul.mubr.msk.bf16.vlgmr.msra.gmra.mrb[0].mxu1 %vm530_vm0, %v3287_v43  ;;  %v185_v53 = vld [vmem:[#allocation6 + $0x138] sm:$0xff]  ;;  %v200_v57 = vld [vmem:[#allocation6 + $0x1b0] sm:$0xff]  ;;  %v2939_v16 = vld [vmem:[#allocation9 + $0x10] sm:$0xff]  }
  0x62   :  { %621 = vmatpush1.bf16.msra.mxu0 %v2545_v46  ;;  %664 = vmatpush1.bf16.msra.mxu1 %v2547_v47  ;;  %v177_v46 = vld [vmem:[#allocation6 + $0xf8] sm:$0xff]  ;;  %v2556_v47 = vcombine.high %v153_v37, %v161_v38  ;;  %v208_v58 = vld [vmem:[#allocation6 + $0x1f0] sm:$0xff]  ;;  %v2942_v19 = vld [vmem:[#allocation9 + $0xd8] sm:$0xff]  }
  0x63   :  { %622 = vmatprep.subr.bf16.mxu0 %v2562_v48  ;;  %665 = vmatprep.subr.bf16.mxu1 %v2564_v49  ;;  %v2553_v48 = vcombine.low %v152_v32, %v160_v35  ;;  %v184_v49 = vld [vmem:[#allocation6 + $0x130] sm:$0xff]  ;;  %v201_v61 = vld [vmem:[#allocation6 + $0x1b8] sm:$0xff]  ;;  %v2602_v3 = vcombine.high %v200_v57, %v208_v58  ;;  %v2601_v6 = vcombine.low %v200_v57, %v208_v58  ;;  %v2944_v21 = vld [vmem:[#allocation9 + $0x98] sm:$0xff]  }
  0x64   :  { %652 = vmatprep.mubr.bf16.mxu0 %v3192_v0  ;;  %695 = vmatprep.mubr.bf16.mxu1 %v3192_v0  ;;  %v2586_v60 = vcombine.high %v184_v49, %v192_v50  ;;  %v2929_v5 = vld [vmem:[#allocation9 + $0x40] sm:$0xff]   ;;  %v2933_v11 = vld [vmem:[#allocation9 + $0x48] sm:$0xff]   ;;  %v2953_v29 = vld [vmem:[#allocation9 + $0x70] sm:$0xff]  }
  0x65   :  { %v2936_v13 = vld [vmem:[#allocation9 + $0x88] sm:$0xff]   ;;  %v2945_v22 = vld [vmem:[#allocation9 + $0x60] sm:$0xff]   ;;  %v2954_v30 = vld [vmem:[#allocation9 + $0xf0] sm:$0xff]  }
  0x66   :  { %623 = vmatpush1.bf16.msra.mxu0 %v2561_v54  ;;  %666 = vmatpush1.bf16.msra.mxu1 %v2563_v55  ;;  %v193_v54 = vld [vmem:[#allocation6 + $0x178] sm:$0xff]  ;;  %v2572_v55 = vcombine.high %v169_v45, %v177_v46  ;;  %v2948_v24 = vld [vmem:[#allocation9 + $0xa0] sm:$0xff]   ;;  %v2956_v32 = vld [vmem:[#allocation9 + $0xb0] sm:$0xff]  }
  0x67   :  { %624 = vmatprep.subr.bf16.mxu0 %v2578_v56  ;;  %667 = vmatprep.subr.bf16.mxu1 %v2580_v59  ;;  %v2569_v56 = vcombine.low %v168_v40, %v176_v41  ;;  %v2571_v59 = vcombine.low %v169_v45, %v177_v46  ;;  %v2588_v63 = vcombine.high %v185_v53, %v193_v54  ;;  %v2951_v27 = vld [vmem:[#allocation9 + $0x28] sm:$0xff]   ;;  %v2959_v35 = vld [vmem:[#allocation9 + $0x38] sm:$0xff]   ;;  %v2961_v37 = vld [vmem:[#allocation9 + $0x140] sm:$0xff]  }
  0x68   :  { %v2962_v38 = vld [vmem:[#allocation9 + $0x1c0] sm:$0xff]  }
  0x6a   :  { %625 = vmatpush1.bf16.msra.mxu0 %v2577_v62  ;;  %668 = vmatpush1.bf16.msra.mxu1 %v2579_v1  ;;  %v209_v62 = vld [vmem:[#allocation6 + $0x1f8] sm:$0xff]  ;;  %v2585_v1 = vcombine.low %v184_v49, %v192_v50 }
  0x6b   :  { %626 = vmatprep.subr.bf16.mxu0 %v2594_v2  ;;  %669 = vmatprep.subr.bf16.mxu1 %v2596_v4  ;;  %v2587_v2 = vcombine.low %v185_v53, %v193_v54  ;;  %v2604_v4 = vcombine.high %v201_v61, %v209_v62  ;;  %v2603_v8 = vcombine.low %v201_v61, %v209_v62 }
  0x6e   :  { %627 = vmatpush1.bf16.msra.mxu0 %v2593_v7  ;;  %670 = vmatpush1.bf16.msra.mxu1 %v2595_v9  ;;  %v2930_v7 = vld [vmem:[#allocation9 + $0xc0] sm:$0xff]  }
  0x6f   :  { %706 = vmatprep.subr.bf16.mxu0 %v2550_v10  ;;  %749 = vmatprep.subr.bf16.mxu1 %v2552_v12  ;;  %v2931_v9 = vld [vmem:[#allocation9] sm:$0xff]   ;;  %v2935_v12 = vld [vmem:[#allocation9 + $0x8] sm:$0xff]  }
  0x70   :  { %v2932_v10 = vld [vmem:[#allocation9 + $0x80] sm:$0xff]  }
  0x71   :  { %2607 = vmatmul.mubr.msk.bf16.vlgmr.msra.gmra.mrb[4].mxu0 %vm530_vm0, %v3287_v43  ;;  %2608 = vmatmul.mubr.msk.bf16.vlgmr.msra.gmra.mrb[4].mxu1 %vm530_vm0, %v3287_v43 }
  0x72   :  { %707 = vmatpush1.bf16.msra.mxu0 %v2549_v15  ;;  %750 = vmatpush1.bf16.msra.mxu1 %v2551_v17  ;;  %v2938_v15 = vld [vmem:[#allocation9 + $0xd0] sm:$0xff]  }
  0x73   :  { %708 = vmatprep.subr.bf16.mxu0 %v2566_v18  ;;  %751 = vmatprep.subr.bf16.mxu1 %v2568_v20  ;;  %v2940_v17 = vld [vmem:[#allocation9 + $0x90] sm:$0xff]   ;;  %v2941_v18 = vld [vmem:[#allocation9 + $0x58] sm:$0xff]  }
  0x74   :  { %738 = vmatprep.mubr.bf16.mxu0 %v3192_v0  ;;  %781 = vmatprep.mubr.bf16.mxu1 %v3192_v0  ;;  %v2943_v20 = vld [vmem:[#allocation9 + $0x18] sm:$0xff]  }
  0x76   :  { %709 = vmatpush1.bf16.msra.mxu0 %v2565_v23  ;;  %752 = vmatpush1.bf16.msra.mxu1 %v2567_v25  ;;  %v2946_v23 = vld [vmem:[#allocation9 + $0xe0] sm:$0xff]   ;;  %v2949_v25 = vld [vmem:[#allocation9 + $0x68] sm:$0xff]  }
  0x77   :  { %710 = vmatprep.subr.bf16.mxu0 %v2582_v26  ;;  %753 = vmatprep.subr.bf16.mxu1 %v2584_v28  ;;  %v2950_v26 = vld [vmem:[#allocation9 + $0xe8] sm:$0xff]  }
  0x78   :  { %v2952_v28 = vld [vmem:[#allocation9 + $0xa8] sm:$0xff]  }
  0x7a   :  { %711 = vmatpush1.bf16.msra.mxu0 %v2581_v31  ;;  %754 = vmatpush1.bf16.msra.mxu1 %v2583_v33  ;;  %v2955_v31 = vld [vmem:[#allocation9 + $0x30] sm:$0xff]   ;;  %v2957_v33 = vld [vmem:[#allocation9 + $0x78] sm:$0xff]  }
  0x7b   :  { %712 = vmatprep.subr.bf16.mxu0 %v2598_v34  ;;  %755 = vmatprep.subr.bf16.mxu1 %v2600_v36  ;;  %v2958_v34 = vld [vmem:[#allocation9 + $0xf8] sm:$0xff]  }
  0x7c   :  { %v2960_v36 = vld [vmem:[#allocation9 + $0xb8] sm:$0xff]  }
  0x7e   :  { %713 = vmatpush1.bf16.msra.mxu0 %v2597_v39  ;;  %756 = vmatpush1.bf16.msra.mxu1 %v2599_v42  ;;  %v981_v39 = vlaneseq  ;;  %v977_v42 = vld [vmem:[#allocation8] sm:$0xff] }
  0x7f   :  { %792 = vmatprep.subr.bf16.mxu0 %v2554_v44  ;;  %835 = vmatprep.subr.bf16.mxu1 %v2556_v47 }
  0x80   :  { %v3311_v40 = vshrl.u32 %v981_v39, 7 }
  0x81   :  { %2609 = vmatmul.mubr.msk.bf16.vlgmr.msra.gmra.mrb[8].mxu0 %vm530_vm0, %v3287_v43  ;;  %2610 = vmatmul.mubr.msk.bf16.vlgmr.msra.gmra.mrb[8].mxu1 %vm530_vm0, %v3287_v43 }
  0x82   :  { %793 = vmatpush1.bf16.msra.mxu0 %v2553_v48  ;;  %836 = vmatpush1.bf16.msra.mxu1 %v2555_v51  ;;  %v983_v41 = vsub.s32 0, %v3311_v40  ;;  %v991_v44 = vsub.s32 2, %v3311_v40  ;;  %v987_v45 = vsub.s32 1, %v3311_v40  ;;  %v995_v46 = vsub.s32 3, %v3311_v40 }
  0x83   :  { %794 = vmatprep.subr.bf16.mxu0 %v2570_v52  ;;  %837 = vmatprep.subr.bf16.mxu1 %v2572_v55 }
  0x84   :  { %824 = vmatprep.mubr.bf16.mxu0 %v3192_v0  ;;  %867 = vmatprep.mubr.bf16.mxu1 %v3192_v0  ;;  %v2934_v0 = vld [vmem:[#allocation9 + $0xc8] sm:$0xff]   ;;  %v984_v47 = vrot.slane %v977_v42, %v983_v41  ;;  %v992_v48 = vrot.slane %v977_v42, %v991_v44  ;;  %v988_v49 = vrot.slane %v977_v42, %v987_v45 }
  0x85   :  { %v996_v50 = vrot.slane %v977_v42, %v995_v46 }
  0x86   :  { %795 = vmatpush1.bf16.msra.mxu0 %v2569_v56  ;;  %838 = vmatpush1.bf16.msra.mxu1 %v2571_v59 }
  0x87   :  { %796 = vmatprep.subr.bf16.mxu0 %v2586_v60  ;;  %839 = vmatprep.subr.bf16.mxu1 %v2588_v63 }
  0x8a   :  { %797 = vmatpush1.bf16.msra.mxu0 %v2585_v1  ;;  %840 = vmatpush1.bf16.msra.mxu1 %v2587_v2 }
  0x8b   :  { %798 = vmatprep.subr.bf16.mxu0 %v2602_v3  ;;  %841 = vmatprep.subr.bf16.mxu1 %v2604_v4 }
  0x8e   :  { %799 = vmatpush1.bf16.msra.mxu0 %v2601_v6  ;;  %842 = vmatpush1.bf16.msra.mxu1 %v2603_v8 }
  0x8f   :  { %2742 = vmatprep.subr.bf16.mxu0 %v2929_v5  ;;  %2764 = vmatprep.subr.bf16.mxu1 %v2930_v7 }
  0x91   :  { %2611 = vmatmul.mubr.msk.bf16.vlgmr.msra.gmra.mrb[12].mxu0 %vm530_vm0, %v3287_v43  ;;  %2612 = vmatmul.mubr.msk.bf16.vlgmr.msra.gmra.mrb[12].mxu1 %vm530_vm0, %v3287_v43  ;;  %v2947_v43 = vld [vmem:[#allocation9 + $0x20] sm:$0xff]  }
  0x92   :  { %2743 = vmatpush3.bf16.msra.mxu0 %v2931_v9  ;;  %2765 = vmatpush3.bf16.msra.mxu1 %v2932_v10 }
  0x93   :  { %2744 = vmatprep.subr.bf16.mxu0 %v2933_v11  ;;  %2766 = vmatprep.subr.bf16.mxu1 %v2934_v0 }
  0x96   :  { %2745 = vmatpush3.bf16.msra.mxu0 %v2935_v12  ;;  %2767 = vmatpush3.bf16.msra.mxu1 %v2936_v13 }
  0x97   :  { %2746 = vmatprep.subr.bf16.mxu0 %v2937_v14  ;;  %2768 = vmatprep.subr.bf16.mxu1 %v2938_v15  ;;  %v2963_v14 = vld [vmem:[#allocation9 + $0x100] sm:$0xff]  }
  0x9a   :  { %2747 = vmatpush3.bf16.msra.mxu0 %v2939_v16  ;;  %2769 = vmatpush3.bf16.msra.mxu1 %v2940_v17  ;;  %v2964_v16 = vld [vmem:[#allocation9 + $0x180] sm:$0xff]   ;;  %v2965_v17 = vld [vmem:[#allocation9 + $0x148] sm:$0xff]  }
  0x9b   :  { %2748 = vmatprep.subr.bf16.mxu0 %v2941_v18  ;;  %2770 = vmatprep.subr.bf16.mxu1 %v2942_v19  ;;  %v999_v18 = vsub.s32 4, %v3311_v40  ;;  %v2966_v19 = vld [vmem:[#allocation9 + $0x1c8] sm:$0xff]  }
  0x9e   :  { %2749 = vmatpush3.bf16.msra.mxu0 %v2943_v20  ;;  %2771 = vmatpush3.bf16.msra.mxu1 %v2944_v21  ;;  %v1003_v20 = vsub.s32 5, %v3311_v40  ;;  %v1007_v21 = vsub.s32 6, %v3311_v40 }
  0x9f   :  { %2750 = vmatprep.subr.bf16.mxu0 %v2945_v22  ;;  %2772 = vmatprep.subr.bf16.mxu1 %v2946_v23  ;;  %v1011_v22 = vsub.s32 7, %v3311_v40  ;;  %v2967_v23 = vld [vmem:[#allocation9 + $0x108] sm:$0xff]  }
  0xa2   :  { %2751 = vmatpush3.bf16.msra.mxu0 %v2947_v43  ;;  %2773 = vmatpush3.bf16.msra.mxu1 %v2948_v24  ;;  %v2968_v43 = vld [vmem:[#allocation9 + $0x188] sm:$0xff]   ;;  %v2969_v24 = vld [vmem:[#allocation9 + $0x150] sm:$0xff]  }
  0xa3   :  { %2752 = vmatprep.subr.bf16.mxu0 %v2949_v25  ;;  %2774 = vmatprep.subr.bf16.mxu1 %v2950_v26  ;;  %v1000_v25 = vrot.slane %v977_v42, %v999_v18  ;;  %v2970_v26 = vld [vmem:[#allocation9 + $0x1d0] sm:$0xff]  }
  0xa6   :  { %2753 = vmatpush3.bf16.msra.mxu0 %v2951_v27  ;;  %2775 = vmatpush3.bf16.msra.mxu1 %v2952_v28  ;;  %v1004_v27 = vrot.slane %v977_v42, %v1003_v20  ;;  %v1008_v28 = vrot.slane %v977_v42, %v1007_v21 }
  0xa7   :  { %2754 = vmatprep.subr.bf16.mxu0 %v2953_v29  ;;  %2776 = vmatprep.subr.bf16.mxu1 %v2954_v30  ;;  %v1012_v29 = vrot.slane %v977_v42, %v1011_v22  ;;  %v2971_v30 = vld [vmem:[#allocation9 + $0x110] sm:$0xff]  }
  0xaa   :  { %2755 = vmatpush3.bf16.msra.mxu0 %v2955_v31  ;;  %2777 = vmatpush3.bf16.msra.mxu1 %v2956_v32  ;;  %v2972_v32 = vld [vmem:[#allocation9 + $0x190] sm:$0xff]  }
  0xab   :  { %2756 = vmatprep.subr.bf16.mxu0 %v2957_v33  ;;  %2778 = vmatprep.subr.bf16.mxu1 %v2958_v34  ;;  %v2973_v33 = vld [vmem:[#allocation9 + $0x158] sm:$0xff]  }
  0xae   :  { %2757 = vmatpush3.bf16.msra.mxu0 %v2959_v35  ;;  %2779 = vmatpush3.bf16.msra.mxu1 %v2960_v36 }
  0xaf   :  { %2786 = vmatprep.subr.bf16.mxu0 %v2961_v37  ;;  %2808 = vmatprep.subr.bf16.mxu1 %v2962_v38  ;;  %v2974_v37 = vld [vmem:[#allocation9 + $0x1d8] sm:$0xff]  }
 0x134   :  { %v568_v51 = vpop.f32.mrb[0].mxu0  ;;  %v611_v53 = vpop.f32.mrb[0].mxu1 }
 0x135   :  { %v1061_v52 = vadd.f32 %v984_v47, %v568_v51  ;;  %v570_v54 = vpop.f32.mrb[1].mxu0  ;;  %v1063_v55 = vadd.f32 %v992_v48, %v611_v53  ;;  %v613_v57 = vpop.f32.mrb[1].mxu1  ;;  %v2975_v53 = vld [vmem:[#allocation9 + $0x118] sm:$0xff]  }
 0x136   :  { %v1062_v56 = vadd.f32 %v988_v49, %v570_v54  ;;  %v572_v58 = vpop.f32.mrb[2].mxu0  ;;  %v1064_v59 = vadd.f32 %v996_v50, %v613_v57  ;;  %v615_v61 = vpop.f32.mrb[2].mxu1 }
 0x137   :  { %v1077_v60 = vadd.f32 %v984_v47, %v572_v58  ;;  %v574_v62 = vpop.f32.mrb[3].mxu0  ;;  %v1095_v63 = vmax.f32 %v1063_v55, 0.0  ;;  %v1079_v1 = vadd.f32 %v992_v48, %v615_v61  ;;  %v617_v3 = vpop.f32.mrb[3].mxu1  ;;  %v1093_v4 = vmax.f32 %v1061_v52, 0.0 }
 0x138   :  { %v1078_v2 = vadd.f32 %v988_v49, %v574_v62  ;;  %v1096_v5 = vmax.f32 %v1064_v59, 0.0  ;;  %v1080_v7 = vadd.f32 %v996_v50, %v617_v3  ;;  %v1094_v8 = vmax.f32 %v1062_v56, 0.0  ;;  %v2976_v59 = vld [vmem:[#allocation9 + $0x198] sm:$0xff]  }
 0x139   :  { %v1109_v6 = vmax.f32 %v1077_v60, 0.0  ;;  %v1111_v9 = vmax.f32 %v1079_v1, 0.0  ;;  %v2977_v60 = vld [vmem:[#allocation9 + $0x160] sm:$0xff]  }
 0x13a   :  { %v1110_v10 = vmax.f32 %v1078_v2, 0.0  ;;  %v1112_v0 = vmax.f32 %v1080_v7, 0.0  ;;  %v2978_v1 = vld [vmem:[#allocation9 + $0x1e0] sm:$0xff]  }
 0x13b   :  { %v1125_v11 = vpack.c.bf16 %v1109_v6, %v1093_v4  ;;  %v1127_v12 = vpack.c.bf16 %v1111_v9, %v1095_v63  ;;  %v2979_v6 = vld [vmem:[#allocation9 + $0x120] sm:$0xff]  }
 0x13c   :  { %v1126_v13 = vpack.c.bf16 %v1110_v10, %v1094_v8  ;;  %v1128_v15 = vpack.c.bf16 %v1112_v0, %v1096_v5  ;;  %v2980_v9 = vld [vmem:[#allocation9 + $0x1a0] sm:$0xff]   ;;  %v2981_v10 = vld [vmem:[#allocation9 + $0x168] sm:$0xff]  }
 0x13d   :  { %v2982_v0 = vld [vmem:[#allocation9 + $0x1e8] sm:$0xff]  }
 0x13e   :  { %2204 = vmatprep.mubr.bf16.mxu0 %v1126_v13  ;;  %2245 = vmatprep.mubr.bf16.mxu1 %v1128_v15  ;;  %v2983_v13 = vld [vmem:[#allocation9 + $0x128] sm:$0xff]   ;;  %v2985_v15 = vld [vmem:[#allocation9 + $0x170] sm:$0xff]  }
 0x13f   :  { %2205 = vmatmul.mubr.bf16.vlgmr.msra.gmra.mrb[16].mxu0 %v1125_v11  ;;  %2246 = vmatmul.mubr.bf16.vlgmr.msra.gmra.mrb[16].mxu1 %v1127_v12  ;;  %v3341_v12 = vld [vmem:[#allocation8 + $0x8] sm:$0xff] }
 0x140   :  { %2787 = vmatpush3.bf16.msra.mxu0 %v2963_v14  ;;  %2809 = vmatpush3.bf16.msra.mxu1 %v2964_v16  ;;  %v2984_v14 = vld [vmem:[#allocation9 + $0x1a8] sm:$0xff]   ;;  %v1016_v16 = vrot.slane %v3341_v12, %v983_v41  ;;  %v2988_v41 = vld [vmem:[#allocation9 + $0x1b0] sm:$0xff]  }
 0x141   :  { %2788 = vmatprep.subr.bf16.mxu0 %v2965_v17  ;;  %2810 = vmatprep.subr.bf16.mxu1 %v2966_v19  ;;  %v2986_v17 = vld [vmem:[#allocation9 + $0x1f0] sm:$0xff]   ;;  %v1020_v19 = vrot.slane %v3341_v12, %v987_v45  ;;  %v2990_v45 = vld [vmem:[#allocation9 + $0x1f8] sm:$0xff]  }
 0x144   :  { %2789 = vmatpush3.bf16.msra.mxu0 %v2967_v23  ;;  %v654_v31 = vpop.f32.mrb[4].mxu0  ;;  %2811 = vmatpush3.bf16.msra.mxu1 %v2968_v43  ;;  %v697_v36 = vpop.f32.mrb[4].mxu1  ;;  %v1024_v23 = vrot.slane %v3341_v12, %v991_v44  ;;  %v1028_v43 = vrot.slane %v3341_v12, %v995_v46 }
 0x145   :  { %2790 = vmatprep.subr.bf16.mxu0 %v2969_v24  ;;  %v1065_v34 = vadd.f32 %v1000_v25, %v654_v31  ;;  %v656_v35 = vpop.f32.mrb[5].mxu0  ;;  %2812 = vmatprep.subr.bf16.mxu1 %v2970_v26  ;;  %v1067_v47 = vadd.f32 %v1008_v28, %v697_v36  ;;  %v699_v48 = vpop.f32.mrb[5].mxu1  ;;  %v2987_v24 = vld [vmem:[#allocation9 + $0x130] sm:$0xff]   ;;  %v2989_v26 = vld [vmem:[#allocation9 + $0x178] sm:$0xff]  }
 0x146   :  { %v1066_v38 = vadd.f32 %v1004_v27, %v656_v35  ;;  %v658_v39 = vpop.f32.mrb[6].mxu0  ;;  %v1068_v42 = vadd.f32 %v1012_v29, %v699_v48  ;;  %v701_v52 = vpop.f32.mrb[6].mxu1 }
 0x147   :  { %v1097_v49 = vmax.f32 %v1065_v34, 0.0  ;;  %v1081_v50 = vadd.f32 %v1000_v25, %v658_v39  ;;  %v660_v51 = vpop.f32.mrb[7].mxu0  ;;  %v1099_v55 = vmax.f32 %v1067_v47, 0.0  ;;  %v1083_v57 = vadd.f32 %v1008_v28, %v701_v52  ;;  %v703_v58 = vpop.f32.mrb[7].mxu1 }
 0x148   :  { %2791 = vmatpush3.bf16.msra.mxu0 %v2971_v30  ;;  %v1098_v54 = vmax.f32 %v1066_v38, 0.0  ;;  %v1082_v56 = vadd.f32 %v1004_v27, %v660_v51  ;;  %2813 = vmatpush3.bf16.msra.mxu1 %v2972_v32  ;;  %v1100_v62 = vmax.f32 %v1068_v42, 0.0  ;;  %v1084_v63 = vadd.f32 %v1012_v29, %v703_v58  ;;  %v2993_v51 = vld [vmem:[#allocation9 + $0x240] sm:$0xff]  }
 0x149   :  { %2792 = vmatprep.subr.bf16.mxu0 %v2973_v33  ;;  %v1113_v61 = vmax.f32 %v1081_v50, 0.0  ;;  %2814 = vmatprep.subr.bf16.mxu1 %v2974_v37  ;;  %v1115_v3 = vmax.f32 %v1083_v57, 0.0  ;;  %v2991_v37 = vld [vmem:[#allocation9 + $0x138] sm:$0xff]  }
 0x14a   :  { %v1114_v2 = vmax.f32 %v1082_v56, 0.0  ;;  %v1116_v5 = vmax.f32 %v1084_v63, 0.0  ;;  %v2992_v50 = vld [vmem:[#allocation9 + $0x1b8] sm:$0xff]   ;;  %v2997_v63 = vld [vmem:[#allocation9 + $0x248] sm:$0xff]  }
 0x14b   :  { %v3337_v4 = vpack.c.bf16 %v1113_v61, %v1097_v49  ;;  %v3339_v8 = vpack.c.bf16 %v1115_v3, %v1099_v55  ;;  %v2999_v3 = vld [vmem:[#allocation9 + $0x208] sm:$0xff]  }
 0x14c   :  { %2793 = vmatpush3.bf16.msra.mxu0 %v2975_v53  ;;  %v1130_v7 = vpack.c.bf16 %v1114_v2, %v1098_v54  ;;  %2815 = vmatpush3.bf16.msra.mxu1 %v2976_v59  ;;  %v1132_v11 = vpack.c.bf16 %v1116_v5, %v1100_v62  ;;  %v2994_v54 = vld [vmem:[#allocation9 + $0x2c0] sm:$0xff]   ;;  %v2998_v2 = vld [vmem:[#allocation9 + $0x2c8] sm:$0xff]  }
 0x14d   :  { %2794 = vmatprep.subr.bf16.mxu0 %v2977_v60  ;;  %2816 = vmatprep.subr.bf16.mxu1 %v2978_v1  ;;  %v2995_v59 = vld [vmem:[#allocation9 + $0x200] sm:$0xff]   ;;  %v3000_v5 = vld [vmem:[#allocation9 + $0x288] sm:$0xff]  }
 0x14e   :  { %2286 = vmatprep.mubr.bf16.mxu0 %v1130_v7  ;;  %2327 = vmatprep.mubr.bf16.mxu1 %v1132_v11  ;;  %v2996_v62 = vld [vmem:[#allocation9 + $0x280] sm:$0xff]   ;;  %v1032_v7 = vrot.slane %v3341_v12, %v999_v18  ;;  %v3003_v11 = vld [vmem:[#allocation9 + $0x210] sm:$0xff]  }
 0x14f   :  { %v3004_v18 = vld [vmem:[#allocation9 + $0x290] sm:$0xff]  }
 0x150   :  { %2795 = vmatpush3.bf16.msra.mxu0 %v2979_v6  ;;  %2817 = vmatpush3.bf16.msra.mxu1 %v2980_v9  ;;  %v3001_v6 = vld [vmem:[#allocation9 + $0x250] sm:$0xff]  }
 0x151   :  { %2796 = vmatprep.subr.bf16.mxu0 %v2981_v10  ;;  %2818 = vmatprep.subr.bf16.mxu1 %v2982_v0  ;;  %v3002_v9 = vld [vmem:[#allocation9 + $0x2d0] sm:$0xff]   ;;  %v1036_v10 = vrot.slane %v3341_v12, %v1003_v20  ;;  %v3006_v20 = vld [vmem:[#allocation9 + $0x2d8] sm:$0xff]  }
 0x154   :  { %2797 = vmatpush3.bf16.msra.mxu0 %v2983_v13  ;;  %v740_v25 = vpop.f32.mrb[8].mxu0  ;;  %2819 = vmatpush3.bf16.msra.mxu1 %v2984_v14  ;;  %v783_v29 = vpop.f32.mrb[8].mxu1  ;;  %v3005_v13 = vld [vmem:[#allocation9 + $0x258] sm:$0xff]  }
 0x155   :  { %2798 = vmatprep.subr.bf16.mxu0 %v2985_v15  ;;  %v1069_v27 = vadd.f32 %v1016_v16, %v740_v25  ;;  %v742_v28 = vpop.f32.mrb[9].mxu0  ;;  %2820 = vmatprep.subr.bf16.mxu1 %v2986_v17  ;;  %v1071_v32 = vadd.f32 %v1024_v23, %v783_v29  ;;  %v785_v44 = vpop.f32.mrb[9].mxu1  ;;  %v3007_v25 = vld [vmem:[#allocation9 + $0x218] sm:$0xff]  }
 0x156   :  { %v1070_v30 = vadd.f32 %v1020_v19, %v742_v28  ;;  %v744_v31 = vpop.f32.mrb[10].mxu0  ;;  %v1072_v46 = vadd.f32 %v1028_v43, %v785_v44  ;;  %v787_v36 = vpop.f32.mrb[10].mxu1 }
 0x157   :  { %v1101_v33 = vmax.f32 %v1069_v27, 0.0  ;;  %v1085_v34 = vadd.f32 %v1016_v16, %v744_v31  ;;  %v746_v35 = vpop.f32.mrb[11].mxu0  ;;  %v1103_v39 = vmax.f32 %v1071_v32, 0.0  ;;  %v1087_v48 = vadd.f32 %v1024_v23, %v787_v36  ;;  %v789_v49 = vpop.f32.mrb[11].mxu1 }
 0x158   :  { %2799 = vmatpush3.bf16.msra.mxu0 %v2987_v24  ;;  %v1102_v38 = vmax.f32 %v1070_v30, 0.0  ;;  %v1086_v47 = vadd.f32 %v1020_v19, %v746_v35  ;;  %2821 = vmatpush3.bf16.msra.mxu1 %v2988_v41  ;;  %v1104_v52 = vmax.f32 %v1072_v46, 0.0  ;;  %v1088_v53 = vadd.f32 %v1028_v43, %v789_v49  ;;  %v3009_v30 = vld [vmem:[#allocation9 + $0x260] sm:$0xff]  }
 0x159   :  { %2800 = vmatprep.subr.bf16.mxu0 %v2989_v26  ;;  %v1117_v42 = vmax.f32 %v1085_v34, 0.0  ;;  %2822 = vmatprep.subr.bf16.mxu1 %v2990_v45  ;;  %v1119_v56 = vmax.f32 %v1087_v48, 0.0  ;;  %v3008_v45 = vld [vmem:[#allocation9 + $0x298] sm:$0xff]   ;;  %v3013_v48 = vld [vmem:[#allocation9 + $0x268] sm:$0xff]  }
 0x15a   :  { %v1118_v55 = vmax.f32 %v1086_v47, 0.0  ;;  %v1120_v58 = vmax.f32 %v1088_v53, 0.0  ;;  %v3012_v47 = vld [vmem:[#allocation9 + $0x2a0] sm:$0xff]   ;;  %v3018_v53 = vld [vmem:[#allocation9 + $0x2f0] sm:$0xff]  }
 0x15b   :  { %v3355_v57 = vpack.c.bf16 %v1117_v42, %v1101_v33  ;;  %v3357_v61 = vpack.c.bf16 %v1119_v56, %v1103_v39  ;;  %v3010_v33 = vld [vmem:[#allocation9 + $0x2e0] sm:$0xff]   ;;  %v3016_v42 = vld [vmem:[#allocation9 + $0x2a8] sm:$0xff]   ;;  %v3021_v56 = vld [vmem:[#allocation9 + $0x278] sm:$0xff]  }
 0x15c   :  { %2801 = vmatpush3.bf16.msra.mxu0 %v2991_v37  ;;  %v1134_v60 = vpack.c.bf16 %v1118_v55, %v1102_v38  ;;  %2823 = vmatpush3.bf16.msra.mxu1 %v2992_v50  ;;  %v1136_v1 = vpack.c.bf16 %v1120_v58, %v1104_v52  ;;  %v3011_v37 = vld [vmem:[#allocation9 + $0x220] sm:$0xff]   ;;  %v3014_v50 = vld [vmem:[#allocation9 + $0x2e8] sm:$0xff]   ;;  %v3017_v52 = vld [vmem:[#allocation9 + $0x270] sm:$0xff]  }
 0x15d   :  { %2830 = vmatprep.subr.bf16.mxu0 %v2993_v51  ;;  %2852 = vmatprep.subr.bf16.mxu1 %v2994_v54  ;;  %v3015_v51 = vld [vmem:[#allocation9 + $0x228] sm:$0xff]   ;;  %v3019_v54 = vld [vmem:[#allocation9 + $0x230] sm:$0xff]   ;;  %v3022_v58 = vld [vmem:[#allocation9 + $0x2f8] sm:$0xff]  }
 0x15e   :  { %v3020_v55 = vld [vmem:[#allocation9 + $0x2b0] sm:$0xff]  }
 0x15f   :  { %2287 = vmatmul.mubr.bf16.vlgmr.msra.gmra.mrb[20].mxu0 %v3337_v4  ;;  %2328 = vmatmul.mubr.bf16.vlgmr.msra.gmra.mrb[20].mxu1 %v3339_v8  ;;  %v1040_v4 = vrot.slane %v3341_v12, %v1007_v21  ;;  %v1044_v8 = vrot.slane %v3341_v12, %v1011_v22 }
 0x160   :  { %2831 = vmatpush3.bf16.msra.mxu0 %v2995_v59  ;;  %2853 = vmatpush3.bf16.msra.mxu1 %v2996_v62  ;;  %v3023_v59 = vld [vmem:[#allocation9 + $0x238] sm:$0xff]   ;;  %v3025_v62 = vld [vmem:[#allocation9 + $0x340] sm:$0xff]  }
 0x161   :  { %2832 = vmatprep.subr.bf16.mxu0 %v2997_v63  ;;  %2854 = vmatprep.subr.bf16.mxu1 %v2998_v2  ;;  %v3026_v63 = vld [vmem:[#allocation9 + $0x3c0] sm:$0xff]  }
 0x162   :  { %2368 = vmatprep.mubr.bf16.mxu0 %v1134_v60  ;;  %2409 = vmatprep.mubr.bf16.mxu1 %v1136_v1  ;;  %v3024_v60 = vld [vmem:[#allocation9 + $0x2b8] sm:$0xff]   ;;  %v3027_v1 = vld [vmem:[#allocation9 + $0x300] sm:$0xff]  }
 0x163   :  { %v3028_v2 = vld [vmem:[#allocation9 + $0x380] sm:$0xff]  }
 0x164   :  { %2833 = vmatpush3.bf16.msra.mxu0 %v2999_v3  ;;  %v826_v0 = vpop.f32.mrb[12].mxu0  ;;  %2855 = vmatpush3.bf16.msra.mxu1 %v3000_v5  ;;  %v869_v16 = vpop.f32.mrb[12].mxu1  ;;  %v3029_v3 = vld [vmem:[#allocation9 + $0x348] sm:$0xff]  }
 0x165   :  { %2834 = vmatprep.subr.bf16.mxu0 %v3001_v6  ;;  %v1073_v14 = vadd.f32 %v1032_v7, %v826_v0  ;;  %v828_v15 = vpop.f32.mrb[13].mxu0  ;;  %2856 = vmatprep.subr.bf16.mxu1 %v3002_v9  ;;  %v1075_v21 = vadd.f32 %v1040_v4, %v869_v16  ;;  %v871_v23 = vpop.f32.mrb[13].mxu1  ;;  %v3030_v5 = vld [vmem:[#allocation9 + $0x3c8] sm:$0xff]   ;;  %v3033_v9 = vld [vmem:[#allocation9 + $0x350] sm:$0xff]   ;;  %v3040_v0 = vld [vmem:[#allocation9 + $0x398] sm:$0xff]  }
 0x166   :  { %v1074_v17 = vadd.f32 %v1036_v10, %v828_v15  ;;  %v830_v19 = vpop.f32.mrb[14].mxu0  ;;  %v1076_v22 = vadd.f32 %v1044_v8, %v871_v23  ;;  %v873_v12 = vpop.f32.mrb[14].mxu1  ;;  %v3031_v6 = vld [vmem:[#allocation9 + $0x308] sm:$0xff]   ;;  %v3044_v15 = vld [vmem:[#allocation9 + $0x3a0] sm:$0xff]   ;;  %v3050_v23 = vld [vmem:[#allocation9 + $0x3f0] sm:$0xff]  }
 0x167   :  { %v1105_v43 = vmax.f32 %v1073_v14, 0.0  ;;  %v1089_v40 = vadd.f32 %v1032_v7, %v830_v19  ;;  %v832_v24 = vpop.f32.mrb[15].mxu0  ;;  %v1107_v26 = vmax.f32 %v1075_v21, 0.0  ;;  %v1091_v28 = vadd.f32 %v1040_v4, %v873_v12  ;;  %v875_v29 = vpop.f32.mrb[15].mxu1  ;;  %v3032_v7 = vld [vmem:[#allocation9 + $0x388] sm:$0xff]   ;;  %v3035_v4 = vld [vmem:[#allocation9 + $0x310] sm:$0xff]  }
 0x168   :  { %2835 = vmatpush3.bf16.msra.mxu0 %v3003_v11  ;;  %v1106_v41 = vmax.f32 %v1074_v17, 0.0  ;;  %v1090_v27 = vadd.f32 %v1036_v10, %v832_v24  ;;  %2857 = vmatpush3.bf16.msra.mxu1 %v3004_v18  ;;  %v1108_v32 = vmax.f32 %v1076_v22, 0.0  ;;  %v1092_v44 = vadd.f32 %v1044_v8, %v875_v29  ;;  %v3034_v10 = vld [vmem:[#allocation9 + $0x3d0] sm:$0xff]   ;;  %v3037_v11 = vld [vmem:[#allocation9 + $0x358] sm:$0xff]   ;;  %v3041_v18 = vld [vmem:[#allocation9 + $0x360] sm:$0xff]  }
 0x169   :  { %2836 = vmatprep.subr.bf16.mxu0 %v3005_v13  ;;  %v1121_v31 = vmax.f32 %v1089_v40, 0.0  ;;  %2858 = vmatprep.subr.bf16.mxu1 %v3006_v20  ;;  %v1123_v35 = vmax.f32 %v1091_v28, 0.0  ;;  %v3036_v8 = vld [vmem:[#allocation9 + $0x390] sm:$0xff]   ;;  %v3042_v13 = vld [vmem:[#allocation9 + $0x3e0] sm:$0xff]   ;;  %v3045_v16 = vld [vmem:[#allocation9 + $0x368] sm:$0xff]  }
 0x16a   :  { %v1122_v34 = vmax.f32 %v1090_v27, 0.0  ;;  %v1124_v36 = vmax.f32 %v1092_v44, 0.0  ;;  %v3043_v14 = vld [vmem:[#allocation9 + $0x320] sm:$0xff]   ;;  %v3046_v20 = vld [vmem:[#allocation9 + $0x3e8] sm:$0xff]   ;;  %v3049_v21 = vld [vmem:[#allocation9 + $0x370] sm:$0xff]  }
 0x16b   :  { %v3373_v46 = vpack.c.bf16 %v1121_v31, %v1105_v43  ;;  %v3375_v39 = vpack.c.bf16 %v1123_v35, %v1107_v26  ;;  %v3047_v17 = vld [vmem:[#allocation9 + $0x328] sm:$0xff]   ;;  %v3051_v43 = vld [vmem:[#allocation9 + $0x330] sm:$0xff]   ;;  %v3053_v24 = vld [vmem:[#allocation9 + $0x378] sm:$0xff]  }
 0x16c   :  { %2837 = vmatpush3.bf16.msra.mxu0 %v3007_v25  ;;  %v1138_v38 = vpack.c.bf16 %v1122_v34, %v1106_v41  ;;  %2859 = vmatpush3.bf16.msra.mxu1 %v3008_v45  ;;  %v1140_v49 = vpack.c.bf16 %v1124_v36, %v1108_v32  ;;  %v3048_v19 = vld [vmem:[#allocation9 + $0x3a8] sm:$0xff]   ;;  %v3052_v40 = vld [vmem:[#allocation9 + $0x3b0] sm:$0xff]   ;;  %v3054_v22 = vld [vmem:[#allocation9 + $0x3f8] sm:$0xff]  }
 0x16d   :  { %2838 = vmatprep.subr.bf16.mxu0 %v3009_v30  ;;  %2860 = vmatprep.subr.bf16.mxu1 %v3010_v33  ;;  %v3055_v12 = vld [vmem:[#allocation9 + $0x338] sm:$0xff]   ;;  %v2613_v27 = vld [vmem:[%s3403_s4] ss:$0 sm:$0xff] }
 0x16e   :  { %v3056_v25 = vld [vmem:[#allocation9 + $0x3b8] sm:$0xff]  }
 0x170   :  { %2839 = vmatpush3.bf16.msra.mxu0 %v3011_v37  ;;  %2861 = vmatpush3.bf16.msra.mxu1 %v3012_v47 }
 0x171   :  { %2840 = vmatprep.subr.bf16.mxu0 %v3013_v48  ;;  %2862 = vmatprep.subr.bf16.mxu1 %v3014_v50 }
 0x174   :  { %2841 = vmatpush3.bf16.msra.mxu0 %v3015_v51  ;;  %2863 = vmatpush3.bf16.msra.mxu1 %v3016_v42 }
 0x175   :  { %2842 = vmatprep.subr.bf16.mxu0 %v3017_v52  ;;  %2864 = vmatprep.subr.bf16.mxu1 %v3018_v53 }
 0x178   :  { %2843 = vmatpush3.bf16.msra.mxu0 %v3019_v54  ;;  %2865 = vmatpush3.bf16.msra.mxu1 %v3020_v55 }
 0x179   :  { %2844 = vmatprep.subr.bf16.mxu0 %v3021_v56  ;;  %2866 = vmatprep.subr.bf16.mxu1 %v3022_v58 }
 0x17c   :  { %2845 = vmatpush3.bf16.msra.mxu0 %v3023_v59  ;;  %2867 = vmatpush3.bf16.msra.mxu1 %v3024_v60 }
 0x17d   :  { %2874 = vmatprep.subr.bf16.mxu0 %v3025_v62  ;;  %2896 = vmatprep.subr.bf16.mxu1 %v3026_v63 }
 0x17f   :  { %2369 = vmatmul.mubr.bf16.vlgmr.msra.gmra.mrb[24].mxu0 %v3355_v57  ;;  %2410 = vmatmul.mubr.bf16.vlgmr.msra.gmra.mrb[24].mxu1 %v3357_v61  ;;  %v3038_v57 = vld [vmem:[#allocation9 + $0x3d8] sm:$0xff]  }
 0x180   :  { %2875 = vmatpush3.bf16.msra.mxu0 %v3027_v1  ;;  %2897 = vmatpush3.bf16.msra.mxu1 %v3028_v2  ;;  %v3039_v61 = vld [vmem:[#allocation9 + $0x318] sm:$0xff]  }
 0x181   :  { %2876 = vmatprep.subr.bf16.mxu0 %v3029_v3  ;;  %2898 = vmatprep.subr.bf16.mxu1 %v3030_v5 }
 0x182   :  { %2450 = vmatprep.mubr.bf16.mxu0 %v1138_v38  ;;  %2491 = vmatprep.mubr.bf16.mxu1 %v1140_v49 }
 0x184   :  { %2877 = vmatpush3.bf16.msra.mxu0 %v3031_v6  ;;  %2899 = vmatpush3.bf16.msra.mxu1 %v3032_v7 }
 0x185   :  { %2878 = vmatprep.subr.bf16.mxu0 %v3033_v9  ;;  %2900 = vmatprep.subr.bf16.mxu1 %v3034_v10 }
 0x188   :  { %2879 = vmatpush3.bf16.msra.mxu0 %v3035_v4  ;;  %2901 = vmatpush3.bf16.msra.mxu1 %v3036_v8 }
 0x189   :  { %2880 = vmatprep.subr.bf16.mxu0 %v3037_v11  ;;  %2902 = vmatprep.subr.bf16.mxu1 %v3038_v57 }
 0x18c   :  { %2881 = vmatpush3.bf16.msra.mxu0 %v3039_v61  ;;  %2903 = vmatpush3.bf16.msra.mxu1 %v3040_v0 }
 0x18d   :  { %2882 = vmatprep.subr.bf16.mxu0 %v3041_v18  ;;  %2904 = vmatprep.subr.bf16.mxu1 %v3042_v13 }
 0x190   :  { %2883 = vmatpush3.bf16.msra.mxu0 %v3043_v14  ;;  %2905 = vmatpush3.bf16.msra.mxu1 %v3044_v15 }
 0x191   :  { %2884 = vmatprep.subr.bf16.mxu0 %v3045_v16  ;;  %2906 = vmatprep.subr.bf16.mxu1 %v3046_v20 }
 0x194   :  { %2885 = vmatpush3.bf16.msra.mxu0 %v3047_v17  ;;  %2907 = vmatpush3.bf16.msra.mxu1 %v3048_v19 }
 0x195   :  { %2886 = vmatprep.subr.bf16.mxu0 %v3049_v21  ;;  %2908 = vmatprep.subr.bf16.mxu1 %v3050_v23 }
 0x198   :  { %2887 = vmatpush3.bf16.msra.mxu0 %v3051_v43  ;;  %2909 = vmatpush3.bf16.msra.mxu1 %v3052_v40 }
 0x199   :  { %2888 = vmatprep.subr.bf16.mxu0 %v3053_v24  ;;  %2910 = vmatprep.subr.bf16.mxu1 %v3054_v22 }
 0x19c   :  { %2889 = vmatpush3.bf16.msra.mxu0 %v3055_v12  ;;  %2911 = vmatpush3.bf16.msra.mxu1 %v3056_v25 }
 0x19f   :  { %2451 = vmatmul.mubr.bf16.vlgmr.msra.gmra.mrb[28].mxu0 %v3373_v46  ;;  %2492 = vmatmul.mubr.bf16.vlgmr.msra.gmra.mrb[28].mxu1 %v3375_v39 }
 0x212   :  { %v2758_v41 = vpop.f32.mrb[16].mxu0  ;;  %v2780_v26 = vpop.f32.mrb[16].mxu1 }
 0x213   :  { %v2759_v28 = vpop.f32.mrb[17].mxu0  ;;  %v2781_v45 = vpop.f32.mrb[17].mxu1 }
 0x214   :  { %v2760_v29 = vadd.f32 %v2759_v28, %v2758_v41  ;;  %v2761_v30 = vpop.f32.mrb[18].mxu0  ;;  %v2782_v31 = vadd.f32 %v2781_v45, %v2780_v26  ;;  %v2783_v32 = vpop.f32.mrb[18].mxu1 }
 0x215   :  { %v2762_v44 = vpop.f32.mrb[19].mxu0  ;;  %v2784_v35 = vpop.f32.mrb[19].mxu1 }
 0x216   :  { %v2207_v33 = vadd.f32 %v2760_v29, %v2613_v27  ;;  %v2763_v34 = vadd.f32 %v2762_v44, %v2761_v30  ;;  %v2785_v36 = vadd.f32 %v2784_v35, %v2783_v32 }
 0x218   :  { %v2248_v46 = vadd.f32 %v2782_v31, %v2207_v33  ;;  %v2210_v37 = vadd.f32 %v2763_v34, %v2613_v27 }
 0x21a   :  { %v2251_v38 = vadd.f32 %v2785_v36, %v2210_v37 }
 0x232   :  { %v2802_v39 = vpop.f32.mrb[20].mxu0  ;;  %v2824_v47 = vpop.f32.mrb[20].mxu1 }
 0x233   :  { %v2803_v48 = vpop.f32.mrb[21].mxu0  ;;  %v2825_v50 = vpop.f32.mrb[21].mxu1 }
 0x234   :  { %v2804_v49 = vadd.f32 %v2803_v48, %v2802_v39  ;;  %v2805_v51 = vpop.f32.mrb[22].mxu0  ;;  %v2826_v42 = vadd.f32 %v2825_v50, %v2824_v47  ;;  %v2827_v52 = vpop.f32.mrb[22].mxu1 }
 0x235   :  { %v2806_v53 = vpop.f32.mrb[23].mxu0  ;;  %v2828_v56 = vpop.f32.mrb[23].mxu1 }
 0x236   :  { %v2289_v54 = vadd.f32 %v2804_v49, %v2248_v46  ;;  %v2807_v55 = vadd.f32 %v2806_v53, %v2805_v51  ;;  %v2829_v58 = vadd.f32 %v2828_v56, %v2827_v52 }
 0x238   :  { %v2330_v59 = vadd.f32 %v2826_v42, %v2289_v54  ;;  %v2292_v60 = vadd.f32 %v2807_v55, %v2251_v38 }
 0x23a   :  { %v2333_v62 = vadd.f32 %v2829_v58, %v2292_v60 }
 0x252   :  { %v2846_v63 = vpop.f32.mrb[24].mxu0  ;;  %v2868_v1 = vpop.f32.mrb[24].mxu1 }
 0x253   :  { %v2847_v2 = vpop.f32.mrb[25].mxu0  ;;  %v2869_v5 = vpop.f32.mrb[25].mxu1 }
 0x254   :  { %v2848_v3 = vadd.f32 %v2847_v2, %v2846_v63  ;;  %v2849_v6 = vpop.f32.mrb[26].mxu0  ;;  %v2870_v7 = vadd.f32 %v2869_v5, %v2868_v1  ;;  %v2871_v9 = vpop.f32.mrb[26].mxu1 }
 0x255   :  { %v2850_v10 = vpop.f32.mrb[27].mxu0  ;;  %v2872_v11 = vpop.f32.mrb[27].mxu1 }
 0x256   :  { %v2371_v4 = vadd.f32 %v2848_v3, %v2330_v59  ;;  %v2851_v8 = vadd.f32 %v2850_v10, %v2849_v6  ;;  %v2873_v57 = vadd.f32 %v2872_v11, %v2871_v9 }
 0x258   :  { %v2412_v61 = vadd.f32 %v2870_v7, %v2371_v4  ;;  %v2374_v0 = vadd.f32 %v2851_v8, %v2333_v62 }
 0x25a   :  { %v2415_v18 = vadd.f32 %v2873_v57, %v2374_v0 }
 0x272   :  { %v2890_v13 = vpop.f32.mrb[28].mxu0  ;;  %v2912_v14 = vpop.f32.mrb[28].mxu1 }
 0x273   :  { %v2891_v15 = vpop.f32.mrb[29].mxu0  ;;  %v2913_v20 = vpop.f32.mrb[29].mxu1 }
 0x274   :  { %v2892_v16 = vadd.f32 %v2891_v15, %v2890_v13  ;;  %v2893_v17 = vpop.f32.mrb[30].mxu0  ;;  %v2914_v19 = vadd.f32 %v2913_v20, %v2912_v14  ;;  %v2915_v21 = vpop.f32.mrb[30].mxu1 }
 0x275   :  { %v2894_v23 = vpop.f32.mrb[31].mxu0  ;;  %v2916_v24 = vpop.f32.mrb[31].mxu1 }
 0x276   :  { %v2453_v43 = vadd.f32 %v2892_v16, %v2412_v61  ;;  %v2895_v40 = vadd.f32 %v2894_v23, %v2893_v17  ;;  %v2917_v22 = vadd.f32 %v2916_v24, %v2915_v21 }
 0x278   :  { %v2456_v12 = vadd.f32 %v2895_v40, %v2415_v18  ;;  %v2494_v25 = vadd.f32 %v2914_v19, %v2453_v43 }
 0x27a   :  { %2500 = vmax.xlane.f32.xlu0 %v2494_v25  ;;  %v2497_v41 = vadd.f32 %v2917_v22, %v2456_v12 }
 0x27e   :  { %2502 = vmax.xlane.f32.xlu0 %v2497_v41 }
 0x307   :  { %v2501_v26 = vpop.xlane.xlu0 %2500 }
 0x308   :  { %v2504_v27 = vsub.f32 %v2494_v25, %v2501_v26 }
 0x30a   :  { %v2506_v28 = vmul.f32 1.442695, %v2504_v27 }
 0x30b   :  { %v2503_v29 = vpop.xlane.xlu0 %2502 }
 0x30c   :  { %v2505_v45 = vsub.f32 %v2497_v41, %v2503_v29  ;;  %3057 = vpow2.f32 %v2506_v28 }
 0x30e   :  { %v2508_v30 = vmul.f32 1.442695, %v2505_v45 }
 0x310   :  { %3059 = vpow2.f32 %v2508_v30 }
 0x316   :  { %v3058_v31 = vpop.eup %3057 }
 0x317   :  { %2510 = vadd.xlane.f32.xlu1 %v3058_v31 }
 0x31a   :  { %v3060_v32 = vpop.eup %3059 }
 0x31b   :  { %2512 = vadd.xlane.f32.xlu1 %v3060_v32 }
 0x3a4   :  { %v2511_v44 = vpop.xlane.xlu1 %2510 }
 0x3a5   :  { %3061 = vlog2.f32 %v2511_v44 }
 0x3a8   :  { %v2513_v33 = vpop.xlane.xlu1 %2512 }
 0x3a9   :  { %3063 = vlog2.f32 %v2513_v33 }
 0x3af   :  { %v3062_v34 = vpop.eup %3061 }
 0x3b0   :  { %v2515_v35 = vmul.f32 0.6931472, %v3062_v34 }
 0x3b2   :  { %v2518_v36 = vsub.f32 %v2504_v27, %v2515_v35 }
 0x3b3   :  { %v3064_v46 = vpop.eup %3063 }
 0x3b4   :  { %2520 = vst [vmem:[#allocation11] sm:$0xff] %v2518_v36  ;;  %v2517_v37 = vmul.f32 0.6931472, %v3064_v46 }
 0x3b6   :  { %v2519_v38 = vsub.f32 %v2505_v45, %v2517_v37 }
 0x3b8   :  { %2521 = vst [vmem:[#allocation11 + $0x8] sm:$0xff] %v2519_v38 }
 0x3b9   :  { %2526 = vsyncadd [#allocation5], 128  ;;  %s3193_s4 = smov [#allocation11]  }
 0x3ba   :  { %s2527_s21 = sshll.u32 %s3193_s4, 4  ;;  %s2528_s21 = int_to_ptr.vmem [resolvable:$true] %s2527_s21 }
 0x3bb   :  { %s3153_s22 = scalar_lea.vmem %s2528_s21, 128  ;;  %s3157_s23 = scalar_lea.vmem %s2528_s21, 256 }
 0x3bc   :  { %p3154_p4 = scmp.ne.s32.totalorder %s2528_s21, %s3153_s22  ;;  %p3158_p5 = scmp.lt.s32.totalorder %s2528_s21, %s2528_s21 }
 0x3bd   :  { %p3159_p6 = scmp.lt.s32.totalorder %s3157_s23, %s3153_s22 }
 0x3bf   :  { %p3160_p7 = por %p3159_p6, %p3158_p5 }
 0x3c1   :  { %p3161_p8 = pnand %p3160_p7, %p3154_p4 }
 0x3c3   :  { %3164 = shalt.err (!%p3161_p8)
}
 0x3c4   :  { %s3165_s26 = scalar_lea.hbm %s3404_s5, 128 }
 0x3c5   :  { %p3166_p9 = scmp.ne.s32.totalorder %s3404_s5, %s3165_s26  ;;  %p3169_p10 = scmp.lt.u32.totalorder %s3165_s26, %s3404_s5 }
 0x3c7   :  { %p3171_p11 = pnand %p3169_p10, %p3166_p9 }
 0x3c9   :  { %3174 = shalt.err (!%p3171_p11)
}
 0x3ca   :  { %2533 = dma.vmem_to_hbm [thread:$0]  %s2528_s21, 128, %s3404_s5, [#allocation5], %s3187_s17, %s3187_s17, %s3188_s18  }
 0x3cb   :  { %3181 = dma.done.wait [#allocation5], 256  }
 0x3cc   :  { %3182 = vsyncadd [#allocation5], 4294967040 }
 0x3cd   :  { %2537 = vsyncpa [#allocation4], 1 }
 0x3ce   :  { %2538 = vsyncpa [#allocation7], 1 }
 0x3cf   :  { %2539 = vsyncpa [#allocation10], 1 }
 0x3d0   :  { %2540 = vsyncpa [#allocation5], 1 }

</bundles_post_ra>
